<compile_context>
chip_gen: v6e
topology: v6e:2x2x1
jax: 0.10.0
libtpu: 0.0.40
codegen_flags: <defaults>
</compile_context>

<pallas_src>
import functools
import math

import jax
import jax.numpy as jnp
from jax.experimental import pallas as pl
from jax.experimental.pallas import tpu as pltpu


def _cdiv(a, b):
    return (a + b - 1) // b


def _round_up(v, m):
    return (v + m - 1) // m * m


def _mix32(x):
    """'triple32' integer finalizer: uint32 -> well-mixed uint32 (portable PRNG)."""
    x = x ^ (x >> 17)
    x = x * jnp.uint32(0xED5AD4BB)
    x = x ^ (x >> 11)
    x = x * jnp.uint32(0xAC4C1B51)
    x = x ^ (x >> 15)
    x = x * jnp.uint32(0x31848BAB)
    x = x ^ (x >> 14)
    return x


def _box_muller(b1, b2):
    """Two uint32 bit fields -> two independent N(0,1) float32 fields.

    Exponent-bit trick (no int->float converts).  The second output avoids a
    full sin polynomial: sin(theta) = sign * sqrt(1 - cos(theta)^2), where the
    sign is recovered exactly from bit 31 of b2 (the mantissa MSB of theta's
    uniform, i.e. theta >= pi).  One log + one cos + two EUP sqrts per pair.
    """
    exp_one = jnp.uint32(0x3F800000)
    f1 = jax.lax.bitcast_convert_type((b1 >> 9) | exp_one, jnp.float32)  # [1, 2)
    f2 = jax.lax.bitcast_convert_type((b2 >> 9) | exp_one, jnp.float32)  # [1, 2)
    u1 = 2.0 - f1                              # (0, 1]  -- avoids log(0)
    theta = (2.0 * math.pi) * (f2 - 1.0)       # [0, 2*pi)
    r = jnp.sqrt(-2.0 * jnp.log(u1))
    c = jnp.cos(theta)
    s_abs = jnp.sqrt(jnp.maximum(1.0 - c * c, 0.0))
    sgn = b2 & jnp.uint32(0x80000000)          # sign(sin(theta)) bit
    s = jax.lax.bitcast_convert_type(
        jax.lax.bitcast_convert_type(s_abs, jnp.uint32) ^ sgn, jnp.float32)
    return r * c, r * s


def _noise_kernel(seed_ref, x_ref, o_ref, *, std, use_tpu_prng):
    bm, bn = x_ref.shape
    half = bn // 2                       # multiple of 128: lane-aligned split
    pid = pl.program_id(0)

    if use_tpu_prng:
        # Hardware PRNG; (seed, block_id) as separate seed words -> distinct,
        # core-assignment-independent streams per tile.
        pltpu.prng_seed(seed_ref[0], pid)
        bits = pltpu.bitcast(pltpu.prng_random_bits((bm, bn)), jnp.uint32)
        b1 = bits[:, :half]
        b2 = bits[:, half:]
    else:
        # Portable counter-hash path (CPU / interpret mode, where pltpu.prng_*
        # has no lowering).  Counters come from global element indices.
        seed_u = seed_ref[0].astype(jnp.uint32) * jnp.uint32(0x9E3779B9)
        row = jax.lax.broadcasted_iota(jnp.int32, (bm, half), 0)
        col = jax.lax.broadcasted_iota(jnp.int32, (bm, half), 1)
        idx = ((pid * bm + row) * half + col).astype(jnp.uint32)
        base = idx * jnp.uint32(2) + seed_u
        b1 = _mix32(base)
        b2 = _mix32(base + jnp.uint32(1))

    z0, z1 = _box_muller(b1, b2)         # each (bm, half), f32
    std_f = jnp.float32(std)

    if o_ref.dtype == jnp.float32:
        o_ref[:, :half] = x_ref[:, :half] + z0 * std_f
        o_ref[:, half:] = x_ref[:, half:] + z1 * std_f
    else:
        # bf16 etc.: keep the final mul/add/store in the native dtype
        # (bf16 VALU on v6e/v7x) instead of upcasting the whole tile to f32.
        o_ref[:, :half] = x_ref[:, :half] + (z0 * std_f).astype(o_ref.dtype)
        o_ref[:, half:] = x_ref[:, half:] + (z1 * std_f).astype(o_ref.dtype)


def noise_forward(x, std, seed=0, *, block_bytes=2 * 1024 * 1024):
    """Return x + N(0, std^2) noise of x's shape, or x unchanged if std <= 0."""
    if std <= 0:
        return x

    orig_shape = x.shape
    total = x.size

    # Lane width: largest of {1024, 512, 256} dividing the element count so no
    # HBM pad/slice pass is needed (>=256 keeps the in-kernel half-split on a
    # 128-lane boundary).
    lane = next((c for c in (1024, 512, 256) if total % c == 0), None)

    if lane is not None:
        rows = total // lane
        x2d = x.reshape(rows, lane)
        pad = 0
    else:
        # Ragged element counts (rare for NN feature tensors): pad a flat copy.
        # TODO(synk): fold the ragged tail into the kernel (masked tail store)
        # to drop this extra HBM pass for large non-256-multiple tensors.
        lane = 512
        rows = _round_up(_cdiv(total, lane), 8)
        pad = rows * lane - total
        x2d = jnp.pad(x.reshape(-1), (0, pad)).reshape(rows, lane)

    # Block rows: ~block_bytes (f32) per block, sublane-aligned; keep >= 2 grid
    # steps when possible so the "parallel" axis shards across v7x's 2 TCs.
    target_rows = max(8, block_bytes // (lane * 4))
    if rows <= 8:
        bm = rows                                     # single full-extent block
    else:
        bm = max(8, min(target_rows, _round_up(_cdiv(rows, 2), 8)))
    num_blocks = _cdiv(rows, bm)                      # ragged last block is OK

    seed_arr = jnp.asarray([seed], dtype=jnp.int32)
    use_tpu_prng = jax.default_backend() == "tpu"
    kernel = functools.partial(_noise_kernel, std=float(std),
                               use_tpu_prng=use_tpu_prng)

    out2d = pl.pallas_call(
        kernel,
        out_shape=jax.ShapeDtypeStruct((rows, lane), x.dtype),
        grid=(num_blocks,),
        in_specs=[
            pl.BlockSpec(memory_space=pltpu.MemorySpace.SMEM),   # seed scalar
            pl.BlockSpec((bm, lane), lambda i: (i, 0)),
        ],
        out_specs=pl.BlockSpec((bm, lane), lambda i: (i, 0)),
        input_output_aliases={1: 0},          # x slab is consumed in place
        compiler_params=pltpu.CompilerParams(
            dimension_semantics=("parallel",),
            vmem_limit_bytes=32 * 1024 * 1024,
        ),
    )(seed_arr, x2d)

    if pad:
        return out2d.reshape(-1)[:total].reshape(orig_shape)
    return out2d.reshape(orig_shape)


if __name__ == "__main__":
    key = jax.random.PRNGKey(0)
    # NCHW input, matching the PyTorch module's conv-feature usage.
    x = jax.random.normal(key, (2, 4, 16, 16), dtype=jnp.float32)

    std = 0.1
    y = jax.block_until_ready(noise_forward(x, std, seed=1234))

    # Shape/dtype preserved; output differs by zero-mean noise of ~std scale.
    assert y.shape == x.shape and y.dtype == x.dtype
    diff = y - x
    assert bool(jnp.all(jnp.isfinite(diff)))
    assert float(jnp.abs(diff).max()) > 0.0               # noise was added
    assert float(jnp.abs(diff).max()) < 10.0 * std        # bounded, ~N(0, std)
    assert abs(float(diff.mean())) < 0.3 * std            # ~zero mean
    assert 0.7 * std < float(diff.std()) < 1.3 * std      # ~correct scale

    # Different seed -> different noise (fresh draw semantics via seed).
    y2 = jax.block_until_ready(noise_forward(x, std, seed=77))
    assert float(jnp.abs(y2 - y).max()) > 0.0

    # std == 0 path: identity.
    y0 = jax.block_until_ready(noise_forward(x, 0.0))
    assert bool(jnp.array_equal(y0, x))

    # Non-lane-aligned element count exercises the ragged fallback path.
    x_odd = jax.random.normal(jax.random.PRNGKey(1), (2, 3, 5, 7), dtype=jnp.float32)
    y_odd = jax.block_until_ready(noise_forward(x_odd, std, seed=3))
    assert y_odd.shape == x_odd.shape
    assert bool(jnp.all(jnp.isfinite(y_odd - x_odd)))

    print("KERNEL_OK")
</pallas_src>

<mosaic_0001>
module attributes {stable_mosaic.version = 11 : i64} {
  func.func @_noise_kernel(%arg0: i32, %arg1: memref<1xi32, #tpu.memory_space<smem>>, %arg2: memref<2x1024xf32, #tpu.memory_space<vmem>>, %arg3: memref<2x1024xf32, #tpu.memory_space<vmem>>) attributes {dimension_semantics = [#tpu.dimension_semantics<parallel>], iteration_bounds = array<i64: 1>, scalar_prefetch = 0 : i64, scratch_operands = 0 : i64, tpu.core_type = #tpu.core_type<tc>, window_params = [{transform_indices = @transform_0, window_bounds = array<i64: 1>}, {transform_indices = @transform_1, window_bounds = array<i64: 2, 1024>}, {transform_indices = @transform_2, window_bounds = array<i64: 2, 1024>}]} {
    %c0 = arith.constant 0 : index
    %0 = memref.load %arg1[%c0] : memref<1xi32, #tpu.memory_space<smem>>
    %c-1640531527_i32 = arith.constant -1640531527 : i32
    %1 = arith.muli %0, %c-1640531527_i32 : i32
    %2 = tpu.iota {dimensions = array<i32: 0>} : vector<2x512xi32>
    %3 = tpu.iota {dimensions = array<i32: 1>} : vector<2x512xi32>
    %c2_i32 = arith.constant 2 : i32
    %4 = arith.muli %arg0, %c2_i32 : i32
    %5 = vector.broadcast %4 : i32 to vector<2x512xi32>
    %6 = arith.addi %5, %2 : vector<2x512xi32>
    %c512_i32 = arith.constant 512 : i32
    %7 = vector.broadcast %c512_i32 : i32 to vector<2x512xi32>
    %8 = arith.muli %6, %7 : vector<2x512xi32>
    %9 = arith.addi %8, %3 : vector<2x512xi32>
    %c2_i32_0 = arith.constant 2 : i32
    %10 = vector.broadcast %c2_i32_0 : i32 to vector<2x512xi32>
    %11 = arith.muli %9, %10 : vector<2x512xi32>
    %12 = vector.broadcast %1 : i32 to vector<2x512xi32>
    %13 = arith.addi %11, %12 : vector<2x512xi32>
    %c17_i32 = arith.constant 17 : i32
    %14 = vector.broadcast %c17_i32 : i32 to vector<2x512xi32>
    %15 = arith.shrui %13, %14 : vector<2x512xi32>
    %16 = arith.xori %13, %15 : vector<2x512xi32>
    %c-312814405_i32 = arith.constant -312814405 : i32
    %17 = vector.broadcast %c-312814405_i32 : i32 to vector<2x512xi32>
    %18 = arith.muli %16, %17 : vector<2x512xi32>
    %c11_i32 = arith.constant 11 : i32
    %19 = vector.broadcast %c11_i32 : i32 to vector<2x512xi32>
    %20 = arith.shrui %18, %19 : vector<2x512xi32>
    %21 = arith.xori %18, %20 : vector<2x512xi32>
    %c-1404298415_i32 = arith.constant -1404298415 : i32
    %22 = vector.broadcast %c-1404298415_i32 : i32 to vector<2x512xi32>
    %23 = arith.muli %21, %22 : vector<2x512xi32>
    %c15_i32 = arith.constant 15 : i32
    %24 = vector.broadcast %c15_i32 : i32 to vector<2x512xi32>
    %25 = arith.shrui %23, %24 : vector<2x512xi32>
    %26 = arith.xori %23, %25 : vector<2x512xi32>
    %c830770091_i32 = arith.constant 830770091 : i32
    %27 = vector.broadcast %c830770091_i32 : i32 to vector<2x512xi32>
    %28 = arith.muli %26, %27 : vector<2x512xi32>
    %c14_i32 = arith.constant 14 : i32
    %29 = vector.broadcast %c14_i32 : i32 to vector<2x512xi32>
    %30 = arith.shrui %28, %29 : vector<2x512xi32>
    %31 = arith.xori %28, %30 : vector<2x512xi32>
    %c1_i32 = arith.constant 1 : i32
    %32 = vector.broadcast %c1_i32 : i32 to vector<2x512xi32>
    %33 = arith.addi %13, %32 : vector<2x512xi32>
    %c17_i32_1 = arith.constant 17 : i32
    %34 = vector.broadcast %c17_i32_1 : i32 to vector<2x512xi32>
    %35 = arith.shrui %33, %34 : vector<2x512xi32>
    %36 = arith.xori %33, %35 : vector<2x512xi32>
    %c-312814405_i32_2 = arith.constant -312814405 : i32
    %37 = vector.broadcast %c-312814405_i32_2 : i32 to vector<2x512xi32>
    %38 = arith.muli %36, %37 : vector<2x512xi32>
    %c11_i32_3 = arith.constant 11 : i32
    %39 = vector.broadcast %c11_i32_3 : i32 to vector<2x512xi32>
    %40 = arith.shrui %38, %39 : vector<2x512xi32>
    %41 = arith.xori %38, %40 : vector<2x512xi32>
    %c-1404298415_i32_4 = arith.constant -1404298415 : i32
    %42 = vector.broadcast %c-1404298415_i32_4 : i32 to vector<2x512xi32>
    %43 = arith.muli %41, %42 : vector<2x512xi32>
    %c15_i32_5 = arith.constant 15 : i32
    %44 = vector.broadcast %c15_i32_5 : i32 to vector<2x512xi32>
    %45 = arith.shrui %43, %44 : vector<2x512xi32>
    %46 = arith.xori %43, %45 : vector<2x512xi32>
    %c830770091_i32_6 = arith.constant 830770091 : i32
    %47 = vector.broadcast %c830770091_i32_6 : i32 to vector<2x512xi32>
    %48 = arith.muli %46, %47 : vector<2x512xi32>
    %c14_i32_7 = arith.constant 14 : i32
    %49 = vector.broadcast %c14_i32_7 : i32 to vector<2x512xi32>
    %50 = arith.shrui %48, %49 : vector<2x512xi32>
    %51 = arith.xori %48, %50 : vector<2x512xi32>
    %c9_i32 = arith.constant 9 : i32
    %52 = vector.broadcast %c9_i32 : i32 to vector<2x512xi32>
    %53 = arith.shrui %31, %52 : vector<2x512xi32>
    %c1065353216_i32 = arith.constant 1065353216 : i32
    %54 = vector.broadcast %c1065353216_i32 : i32 to vector<2x512xi32>
    %55 = arith.ori %53, %54 : vector<2x512xi32>
    %56 = tpu.bitcast %55 : vector<2x512xi32> -> vector<2x512xf32>
    %c9_i32_8 = arith.constant 9 : i32
    %57 = vector.broadcast %c9_i32_8 : i32 to vector<2x512xi32>
    %58 = arith.shrui %51, %57 : vector<2x512xi32>
    %c1065353216_i32_9 = arith.constant 1065353216 : i32
    %59 = vector.broadcast %c1065353216_i32_9 : i32 to vector<2x512xi32>
    %60 = arith.ori %58, %59 : vector<2x512xi32>
    %61 = tpu.bitcast %60 : vector<2x512xi32> -> vector<2x512xf32>
    %cst = arith.constant 2.000000e+00 : f32
    %62 = vector.broadcast %cst : f32 to vector<2x512xf32>
    %63 = arith.subf %62, %56 : vector<2x512xf32>
    %cst_10 = arith.constant 1.000000e+00 : f32
    %64 = vector.broadcast %cst_10 : f32 to vector<2x512xf32>
    %65 = arith.subf %61, %64 : vector<2x512xf32>
    %cst_11 = arith.constant 6.28318548 : f32
    %66 = vector.broadcast %cst_11 : f32 to vector<2x512xf32>
    %67 = arith.mulf %66, %65 : vector<2x512xf32>
    %68 = math.log %63 : vector<2x512xf32>
    %cst_12 = arith.constant -2.000000e+00 : f32
    %69 = vector.broadcast %cst_12 : f32 to vector<2x512xf32>
    %70 = arith.mulf %69, %68 : vector<2x512xf32>
    %71 = math.sqrt %70 : vector<2x512xf32>
    %72 = math.cos %67 : vector<2x512xf32>
    %73 = arith.mulf %72, %72 : vector<2x512xf32>
    %cst_13 = arith.constant 1.000000e+00 : f32
    %74 = vector.broadcast %cst_13 : f32 to vector<2x512xf32>
    %75 = arith.subf %74, %73 : vector<2x512xf32>
    %cst_14 = arith.constant 0.000000e+00 : f32
    %76 = vector.broadcast %cst_14 : f32 to vector<2x512xf32>
    %77 = arith.maximumf %75, %76 : vector<2x512xf32>
    %78 = math.sqrt %77 : vector<2x512xf32>
    %c-2147483648_i32 = arith.constant -2147483648 : i32
    %79 = vector.broadcast %c-2147483648_i32 : i32 to vector<2x512xi32>
    %80 = arith.andi %51, %79 : vector<2x512xi32>
    %81 = tpu.bitcast %78 : vector<2x512xf32> -> vector<2x512xi32>
    %82 = arith.xori %81, %80 : vector<2x512xi32>
    %83 = tpu.bitcast %82 : vector<2x512xi32> -> vector<2x512xf32>
    %84 = arith.mulf %71, %72 : vector<2x512xf32>
    %85 = arith.mulf %71, %83 : vector<2x512xf32>
    %c0_15 = arith.constant 0 : index
    %c0_16 = arith.constant 0 : index
    %86 = vector.load %arg2[%c0_15, %c0_16] : memref<2x1024xf32, #tpu.memory_space<vmem>>, vector<2x512xf32>
    %cst_17 = arith.constant 1.000000e-01 : f32
    %87 = vector.broadcast %cst_17 : f32 to vector<2x512xf32>
    %88 = arith.mulf %84, %87 : vector<2x512xf32>
    %89 = arith.addf %86, %88 : vector<2x512xf32>
    %c0_18 = arith.constant 0 : index
    %c0_19 = arith.constant 0 : index
    %90 = vector.load %arg3[%c0_18, %c0_19] : memref<2x1024xf32, #tpu.memory_space<vmem>>, vector<2x512xf32>
    tpu.vector_store %arg3[%c0_18, %c0_19], %89 {strides = array<i32>} : memref<2x1024xf32, #tpu.memory_space<vmem>>, vector<2x512xf32>,
    %c0_20 = arith.constant 0 : index
    %c512 = arith.constant 512 : index
    %91 = vector.load %arg2[%c0_20, %c512] : memref<2x1024xf32, #tpu.memory_space<vmem>>, vector<2x512xf32>
    %cst_21 = arith.constant 1.000000e-01 : f32
    %92 = vector.broadcast %cst_21 : f32 to vector<2x512xf32>
    %93 = arith.mulf %85, %92 : vector<2x512xf32>
    %94 = arith.addf %91, %93 : vector<2x512xf32>
    %c0_22 = arith.constant 0 : index
    %c512_23 = arith.constant 512 : index
    %95 = vector.load %arg3[%c0_22, %c512_23] : memref<2x1024xf32, #tpu.memory_space<vmem>>, vector<2x512xf32>
    tpu.vector_store %arg3[%c0_22, %c512_23], %94 {strides = array<i32>} : memref<2x1024xf32, #tpu.memory_space<vmem>>, vector<2x512xf32>,
    return
  }
  func.func @transform_0(%arg0: i32) -> i32 {
    %c0_i32 = arith.constant 0 : i32
    %c0_i32_0 = arith.constant 0 : i32
    return %c0_i32 : i32
  }
  func.func @transform_1(%arg0: i32) -> (i32, i32) {
    %c0_i32 = arith.constant 0 : i32
    %c0_i32_0 = arith.constant 0 : i32
    return %arg0, %c0_i32 : i32, i32
  }
  func.func @transform_2(%arg0: i32) -> (i32, i32) {
    %c0_i32 = arith.constant 0 : i32
    %c0_i32_0 = arith.constant 0 : i32
    return %arg0, %c0_i32 : i32, i32
  }
}

</mosaic_0001>

<bundles_post_ra>
// kernel: tpu_custom_call.1
= control target key start
LH: loop header
LB: loop body
LE: loop exit
PB: predicated region body
PF: predicated region fallthrough
CT: control target
= control target key end

     0   :  { %8 = vsyncpa [#allocation4], 0  ;;  %s1378_s0 = inlined_call_operand.<no memory space> [shape: s32[1], index: 0, kind: input, shape index: {}]   ;;  %s1379_s1 = inlined_call_operand.hbm [shape: f32[2,1024], index: 1, kind: input, shape index: {}, may-alias: {1,2}]   ;;  %s1380_s2 = inlined_call_operand.hbm [shape: f32[2,1024], index: 2, kind: output, shape index: {}, may-alias: {1,2}]  }
   0x1   :  { %9 = vsyncpa [#allocation5], 0  ;;  %s897_s9 = smov [#allocation3]  }
   0x2   :  { %s18_s10 = sshll.u32 %s897_s9, 4  ;;  %s19_s10 = int_to_ptr.vmem [resolvable:$true] %s18_s10 }
   0x3   :  { %s861_s11 = scalar_lea.vmem %s19_s10, 256  ;;  %p866_p1 = scmp.lt.s32.totalorder %s19_s10, %s19_s10 }
   0x4   :  { %p862_p0 = scmp.ne.s32.totalorder %s19_s10, %s861_s11  ;;  %p867_p2 = scmp.lt.s32.totalorder %s861_s11, %s861_s11 }
   0x6   :  { %p868_p3 = por %p867_p2, %p866_p1 }
   0x8   :  { %p869_p4 = pnand %p868_p3, %p862_p0 }
   0xa   :  { %872 = shalt.err (!%p869_p4)
}
   0xb   :  { %21 = dma.hbm_to_vmem [thread:$0]  %s1379_s1, 256, %s19_s10, [#allocation4]  }
   0xc   :  { %893 = dma.done.wait [#allocation4], 256  }
   0xd   :  { %894 = vsyncadd [#allocation4], 4294967040  ;;  %v27_v0 = vlaneseq  ;;  %s26_s16 = smul.u32 2654435769, %s1378_s0  ;;  %s905_s0 = smov [#allocation6]  }
   0xe   :  { %s759_s1 = sshll.u32 %s905_s0, 4  ;;  %s760_s1 = int_to_ptr.vmem [resolvable:$true] %s759_s1 }
   0xf   :  { %v924_v1 = vshrl.u32 %v27_v0, 7  ;;  %v30_v2 = vand.u32 127, %v27_v0  ;;  %v46_v11 = vstv %s26_s16  ;;  %s873_s17 = scalar_lea.vmem %s760_s1, 256  ;;  %p878_p6 = scmp.lt.s32.totalorder %s760_s1, %s760_s1 }
  0x10   :  { %p874_p5 = scmp.ne.s32.totalorder %s760_s1, %s873_s17  ;;  %p879_p7 = scmp.lt.s32.totalorder %s873_s17, %s873_s17 }
  0x11   :  { %v31_v3 = vadd.s32 128, %v30_v2  ;;  %v32_v4 = vadd.s32 256, %v30_v2  ;;  %v33_v5 = vadd.s32 384, %v30_v2  ;;  %v37_v6 = vmul.u32 512, %v924_v1 }
  0x12   :  { %p880_p8 = por %p879_p7, %p878_p6 }
  0x13   :  { %v38_v7 = vadd.s32 %v37_v6, %v30_v2  ;;  %v39_v8 = vadd.s32 %v37_v6, %v31_v3  ;;  %v40_v9 = vadd.s32 %v37_v6, %v32_v4  ;;  %v41_v10 = vadd.s32 %v37_v6, %v33_v5 }
  0x14   :  { %p881_p9 = pnand %p880_p8, %p874_p5 }
  0x15   :  { %v42_v12 = vmul.u32 2, %v38_v7  ;;  %v43_v13 = vmul.u32 2, %v39_v8 }
  0x16   :  { %v44_v14 = vmul.u32 2, %v40_v9  ;;  %v45_v15 = vmul.u32 2, %v41_v10 }
  0x17   :  { %v47_v16 = vadd.s32 %v46_v11, %v42_v12  ;;  %v48_v17 = vadd.s32 %v46_v11, %v43_v13 }
  0x18   :  { %v49_v18 = vadd.s32 %v46_v11, %v44_v14  ;;  %v50_v19 = vadd.s32 %v46_v11, %v45_v15 }
  0x19   :  { %v95_v20 = vadd.s32 1, %v47_v16  ;;  %v96_v21 = vadd.s32 1, %v48_v17  ;;  %v51_v60 = vshrl.u32 %v47_v16, 17  ;;  %v52_v61 = vshrl.u32 %v48_v17, 17 }
  0x1a   :  { %v97_v22 = vadd.s32 1, %v49_v18  ;;  %v98_v26 = vadd.s32 1, %v50_v19  ;;  %v53_v5 = vshrl.u32 %v49_v18, 17  ;;  %v54_v6 = vshrl.u32 %v50_v19, 17 }
  0x1b   :  { %v99_v23 = vshrl.u32 %v95_v20, 17  ;;  %v100_v24 = vshrl.u32 %v96_v21, 17  ;;  %v55_v7 = vxor.u32 %v51_v60, %v47_v16  ;;  %v56_v8 = vxor.u32 %v52_v61, %v48_v17 }
  0x1c   :  { %v101_v25 = vshrl.u32 %v97_v22, 17  ;;  %v102_v33 = vshrl.u32 %v98_v26, 17  ;;  %v57_v15 = vxor.u32 %v53_v5, %v49_v18  ;;  %v900_v5 = vmov 2131351028  }
  0x1d   :  { %v103_v27 = vxor.u32 %v99_v23, %v95_v20  ;;  %v104_v28 = vxor.u32 %v100_v24, %v96_v21  ;;  %v58_v20 = vxor.u32 %v54_v6, %v50_v19  ;;  %v59_v21 = vmul.u32 3982152891, %v55_v7 }
  0x1e   :  { %v105_v29 = vxor.u32 %v101_v25, %v97_v22  ;;  %v106_v40 = vxor.u32 %v102_v33, %v98_v26  ;;  %v60_v22 = vmul.u32 3982152891, %v56_v8  ;;  %v61_v26 = vmul.u32 3982152891, %v57_v15 }
  0x1f   :  { %v107_v30 = vmul.u32 3982152891, %v103_v27  ;;  %v108_v31 = vmul.u32 3982152891, %v104_v28  ;;  %v63_v28 = vshrl.u32 %v59_v21, 11 }
  0x20   :  { %v109_v32 = vmul.u32 3982152891, %v105_v29  ;;  %v110_v47 = vmul.u32 3982152891, %v106_v40 }
  0x21   :  { %v111_v34 = vshrl.u32 %v107_v30, 11  ;;  %v112_v35 = vshrl.u32 %v108_v31, 11  ;;  %v62_v27 = vmul.u32 3982152891, %v58_v20  ;;  %v901_v20 = vmov 2102212464  }
  0x22   :  { %v113_v36 = vshrl.u32 %v109_v32, 11  ;;  %v114_v54 = vshrl.u32 %v110_v47, 11 }
  0x23   :  { %v115_v37 = vxor.u32 %v111_v34, %v107_v30  ;;  %v116_v38 = vxor.u32 %v112_v35, %v108_v31  ;;  %v64_v30 = vshrl.u32 %v60_v22, 11  ;;  %v65_v35 = vshrl.u32 %v61_v26, 11 }
  0x24   :  { %v117_v39 = vxor.u32 %v113_v36, %v109_v32  ;;  %v118_v62 = vxor.u32 %v114_v54, %v110_v47  ;;  %v66_v36 = vshrl.u32 %v62_v27, 11 }
  0x25   :  { %v119_v41 = vmul.u32 2890668881, %v115_v37  ;;  %v120_v42 = vmul.u32 2890668881, %v116_v38  ;;  %v946_v37 = vxor.u32 %v63_v28, %v59_v21  ;;  %v948_v38 = vxor.u32 %v64_v30, %v60_v22 }
  0x26   :  { %v121_v43 = vmul.u32 2890668881, %v117_v39  ;;  %v122_v9 = vmul.u32 2890668881, %v118_v62 }
  0x27   :  { %v123_v44 = vshrl.u32 %v119_v41, 15  ;;  %v124_v45 = vshrl.u32 %v120_v42, 15  ;;  %v71_v47 = vmul.u32 2890668881, %v946_v37 }
  0x28   :  { %v125_v46 = vshrl.u32 %v121_v43, 15  ;;  %v126_v23 = vshrl.u32 %v122_v9, 15 }
  0x29   :  { %v127_v48 = vxor.u32 %v123_v44, %v119_v41  ;;  %v128_v49 = vxor.u32 %v124_v45, %v120_v42  ;;  %v954_v45 = vxor.u32 %v65_v35, %v61_v26 }
  0x2a   :  { %v129_v50 = vxor.u32 %v125_v46, %v121_v43  ;;  %v130_v31 = vxor.u32 %v126_v23, %v122_v9  ;;  %v956_v46 = vxor.u32 %v66_v36, %v62_v27  ;;  %v902_v23 = vmov 920167782  }
  0x2b   :  { %v131_v51 = vmul.u32 830770091, %v127_v48  ;;  %v132_v52 = vmul.u32 830770091, %v128_v49 }
  0x2c   :  { %v133_v53 = vmul.u32 830770091, %v129_v50  ;;  %v134_v39 = vmul.u32 830770091, %v130_v31 }
  0x2d   :  { %v135_v55 = vshrl.u32 %v131_v51, 14  ;;  %v136_v56 = vshrl.u32 %v132_v52, 14  ;;  %v72_v48 = vmul.u32 2890668881, %v948_v38  ;;  %v73_v54 = vmul.u32 2890668881, %v954_v45 }
  0x2e   :  { %v137_v57 = vshrl.u32 %v133_v53, 14  ;;  %v138_v49 = vshrl.u32 %v134_v39, 14 }
  0x2f   :  { %v930_v58 = vxor.u32 %v135_v55, %v131_v51  ;;  %v932_v59 = vxor.u32 %v136_v56, %v132_v52  ;;  %v74_v55 = vmul.u32 2890668881, %v956_v46  ;;  %v75_v56 = vshrl.u32 %v71_v47, 15 }
  0x30   :  { %v936_v2 = vxor.u32 %v137_v57, %v133_v53  ;;  %v76_v60 = vshrl.u32 %v72_v48, 15  ;;  %v970_v61 = vxor.u32 %v138_v49, %v134_v39 }
  0x31   :  { %v155_v63 = vshrl.u32 %v930_v58, 9  ;;  %v156_v0 = vshrl.u32 %v932_v59, 9 }
  0x32   :  { %v157_v12 = vshrl.u32 %v936_v2, 9  ;;  %v1026_v37 = vxor.u32 %v76_v60, %v72_v48 }
  0x33   :  { %v159_v3 = vor.u32 1065353216, %v155_v63  ;;  %v160_v4 = vor.u32 1065353216, %v156_v0  ;;  %v898_v63 = vmov 683565275  }
  0x34   :  { %v161_v25 = vor.u32 1065353216, %v157_v12 }
  0x35   :  { %v768_v10 = vadd.f32 -1.0, %v159_v3  ;;  %v769_v11 = vadd.f32 -1.0, %v160_v4  ;;  %v899_v3 = vmov 2475754826  }
  0x36   :  { %v770_v33 = vadd.f32 -1.0, %v161_v25 }
  0x37   :  { %v939_v13 = vmul.f32 6.2831855, %v768_v10  ;;  %v941_v14 = vmul.f32 6.2831855, %v769_v11 }
  0x38   :  { %v950_v41 = vmul.f32 6.2831855, %v770_v33 }
  0x39   :  { %v222_v24 = vand.u32 2139095040, %v939_v13  ;;  %v325_v16 = vand.u32 2139095040, %v941_v14  ;;  %v219_v18 = vand.u32 2147483647, %v939_v13  ;;  %v322_v50 = vand.u32 2147483647, %v941_v14 }
  0x3a   :  { %v428_v51 = vand.u32 2139095040, %v950_v41 }
  0x3b   :  { %v223_v17 = vshrl.u32 %v222_v24, 23  ;;  %v326_v29 = vshrl.u32 %v325_v16, 23  ;;  %v226_v43 = vand.u32 8388607, %v219_v18  ;;  %v977_v7 = vand.u32 8388607, %v322_v50 }
  0x3c   :  { %v429_v8 = vshrl.u32 %v428_v51, 23 }
  0x3d   :  { %v772_v32 = vadd.s32 4294967169, %v223_v17  ;;  %v776_v34 = vadd.s32 4294967169, %v326_v29  ;;  %v227_v52 = vor.u32 8388608, %v226_v43  ;;  %v903_v17 = vmov 1326507024  }
  0x3e   :  { %v78_v43 = vshrl.u32 %v74_v55, 15 }
  0x3f   :  { %v229_v19 = vadd.s32 1, %v772_v32  ;;  %v332_v40 = vadd.s32 1, %v776_v34  ;;  %v981_v11 = vshll.u32 %v227_v52, 8 }
  0x41   :  { %vm230_vm0 = vcmp.gt.s32.totalorder %v229_v19, 0  ;;  %vm333_vm1 = vcmp.gt.s32.totalorder %v332_v40, 0 }
  0x42   :  { %v231_v42 = vsel %vm230_vm0, %v229_v19, 0  ;;  %v966_v57 = vsel %vm333_vm1, %v332_v40, 0 }
  0x43   :  { %v233_v44 = vand.u32 31, %v231_v42  ;;  %v232_v62 = vshrl.u32 %v231_v42, 5  ;;  %v984_v12 = vand.u32 31, %v966_v57  ;;  %v77_v42 = vshrl.u32 %v73_v54, 15 }
  0x45   :  { %v234_v53 = vsub.s32 32, %v233_v44  ;;  %v236_v0 = vshll.u32 %v898_v63, %v233_v44  ;;  %v239_v4 = vshll.u32 %v899_v3, %v233_v44  ;;  %v242_v6 = vshll.u32 %v900_v5, %v233_v44 }
  0x46   :  { %v245_v22 = vshll.u32 %v901_v20, %v233_v44  ;;  %v248_v16 = vshll.u32 %v902_v23, %v233_v44  ;;  %vm251_vm2 = vcmp.lt.s32.totalorder %v232_v62, 1  ;;  %vm252_vm3 = vcmp.lt.s32.totalorder %v232_v62, 2 }
  0x47   :  { %v235_v9 = vshrl.u32 %v898_v63, %v234_v53  ;;  %v237_v10 = vshrl.u32 %v899_v3, %v234_v53  ;;  %v240_v15 = vshrl.u32 %v900_v5, %v234_v53  ;;  %v243_v21 = vshrl.u32 %v901_v20, %v234_v53 }
  0x48   :  { %v246_v24 = vshrl.u32 %v902_v23, %v234_v53  ;;  %v249_v26 = vshrl.u32 %v903_v17, %v234_v53  ;;  %vm253_vm4 = vcmp.lt.s32.totalorder %v232_v62, 3  ;;  %vm254_vm5 = vcmp.lt.s32.totalorder %v232_v62, 4 }
  0x49   :  { %v238_v25 = vor.u32 %v237_v10, %v236_v0  ;;  %v241_v27 = vor.u32 %v240_v15, %v239_v4  ;;  %v244_v28 = vor.u32 %v243_v21, %v242_v6  ;;  %v337_v40 = vsub.s32 32, %v984_v12 }
  0x4a   :  { %v247_v29 = vor.u32 %v246_v24, %v245_v22  ;;  %v250_v30 = vor.u32 %v249_v26, %v248_v16  ;;  %v780_v0 = vadd.s32 4294967169, %v429_v8  ;;  %v158_v4 = vshrl.u32 %v970_v61, 9 }
  0x4b   :  { %v255_v31 = vsel %vm251_vm2, %v235_v9, %v238_v25  ;;  %v256_v32 = vsel %vm254_vm5, %v244_v28, 2102212464  ;;  %v259_v33 = vsel %vm251_vm2, %v238_v25, %v241_v27  ;;  %v263_v19 = vsel %vm251_vm2, %v241_v27, %v244_v28 }
  0x4c   :  { %v260_v34 = vsel %vm254_vm5, %v247_v29, 920167782  ;;  %v257_v35 = vsel %vm253_vm4, %v241_v27, %v256_v32  ;;  %v264_v39 = vsel %vm254_vm5, %v250_v30, 1326507024  ;;  %v1012_v15 = vxor.u32 %v75_v56, %v71_v47 }
  0x4d   :  { %v261_v36 = vsel %vm253_vm4, %v244_v28, %v260_v34  ;;  %v265_v49 = vsel %vm253_vm4, %v247_v29, %v264_v39  ;;  %v258_v6 = vsel %vm252_vm3, %v255_v31, %v257_v35  ;;  %v330_v21 = vor.u32 8388608, %v977_v7 }
  0x4e   :  { %v262_v44 = vsel %vm252_vm3, %v259_v33, %v261_v36  ;;  %v266_v51 = vsel %vm252_vm3, %v263_v19, %v265_v49  ;;  %v339_v22 = vshll.u32 %v898_v63, %v984_v12  ;;  %v340_v24 = vshrl.u32 %v899_v3, %v337_v40 }
  0x4f   :  { %v1000_v52 = vmul.u32.u64.low %v981_v11, %v262_v44  ;;  %v1001_v53 = vmul.u32.u64.high %v981_v11, %v262_v44, %v1000_v52  ;;  %v1007_v9 = vmul.u32.u64.low %v981_v11, %v266_v51  ;;  %v1008_v10 = vmul.u32.u64.high %v981_v11, %v266_v51, %v1007_v9 }
  0x50   :  { %v342_v8 = vshll.u32 %v899_v3, %v984_v12  ;;  %v343_v62 = vshrl.u32 %v900_v5, %v337_v40  ;;  %v345_v25 = vshll.u32 %v900_v5, %v984_v12  ;;  %v346_v16 = vshrl.u32 %v901_v20, %v337_v40 }
  0x51   :  { %v274_v47 = vmul.u32 %v981_v11, %v258_v6  ;;  %v277_v56 = vadd.s32 1, %v1001_v53  ;;  %v435_v7 = vadd.s32 1, %v780_v0  ;;  %v1032_v26 = vxor.u32 %v77_v42, %v73_v54 }
  0x52   :  { %v162_v27 = vor.u32 1065353216, %v158_v4  ;;  %v335_v28 = vshrl.u32 %v966_v57, 5  ;;  %v348_v29 = vshll.u32 %v901_v20, %v984_v12  ;;  %vm276_vm6 = vc.u32 %v1008_v10, %v1000_v52 }
  0x53   :  { %v338_v38 = vshrl.u32 %v898_v63, %v337_v40  ;;  %v341_v48 = vor.u32 %v340_v24, %v339_v22  ;;  %v370_v60 = vshll.u32 %v330_v21, 8  ;;  %v278_v11 = vsel %vm276_vm6, %v277_v56, %v1001_v53 }
  0x54   :  { %v344_v30 = vor.u32 %v343_v62, %v342_v8  ;;  %v347_v31 = vor.u32 %v346_v16, %v345_v25  ;;  %v349_v45 = vshrl.u32 %v902_v23, %v337_v40  ;;  %v279_v54 = vadd.s32 %v278_v11, %v274_v47 }
  0x55   :  { %v351_v57 = vshll.u32 %v902_v23, %v984_v12  ;;  %v352_v32 = vshrl.u32 %v903_v17, %v337_v40  ;;  %vm436_vm7 = vcmp.gt.s32.totalorder %v435_v7, 0  ;;  %vm354_vm8 = vcmp.lt.s32.totalorder %v335_v28, 1 }
  0x56   :  { %v350_v33 = vor.u32 %v349_v45, %v348_v29  ;;  %vm355_vm9 = vcmp.lt.s32.totalorder %v335_v28, 2  ;;  %vm356_vm10 = vcmp.lt.s32.totalorder %v335_v28, 3  ;;  %v280_v34 = vadd.s32 536870912, %v279_v54 }
  0x57   :  { %v353_v19 = vor.u32 %v352_v32, %v351_v57  ;;  %vm357_vm11 = vcmp.lt.s32.totalorder %v335_v28, 4  ;;  %v358_v35 = vsel %vm354_vm8, %v338_v38, %v341_v48  ;;  %v362_v39 = vsel %vm354_vm8, %v341_v48, %v344_v30 }
  0x58   :  { %v359_v36 = vsel %vm357_vm11, %v347_v31, 2102212464  ;;  %v363_v42 = vsel %vm357_vm11, %v350_v33, 920167782  ;;  %v366_v44 = vsel %vm354_vm8, %v344_v30, %v347_v31  ;;  %v1045_v49 = vshrl.u32 %v280_v34, 30 }
  0x59   :  { %v360_v51 = vsel %vm356_vm10, %v344_v30, %v359_v36  ;;  %v364_v53 = vsel %vm356_vm10, %v347_v31, %v363_v42  ;;  %v367_v12 = vsel %vm357_vm11, %v353_v19, 1326507024  ;;  %v1049_v40 = vxor.u32 %v78_v43, %v74_v55 }
  0x5a   :  { %v365_v0 = vsel %vm355_vm9, %v362_v39, %v364_v53  ;;  %v368_v4 = vsel %vm356_vm10, %v350_v33, %v367_v12  ;;  %v437_v6 = vsel %vm436_vm7, %v435_v7, 0  ;;  %v83_v9 = vmul.u32 830770091, %v1012_v15 }
  0x5b   :  { %v282_v21 = vshll.u32 %v1045_v49, 30  ;;  %v361_v22 = vsel %vm355_vm9, %v358_v35, %v360_v51  ;;  %v369_v24 = vsel %vm355_vm9, %v366_v44, %v368_v4  ;;  %v84_v55 = vmul.u32 830770091, %v1026_v37 }
  0x5c   :  { %v1057_v8 = vmul.u32.u64.low %v370_v60, %v369_v24  ;;  %v1058_v62 = vmul.u32.u64.high %v370_v60, %v369_v24, %v1057_v8  ;;  %v1060_v25 = vmul.u32.u64.low %v370_v60, %v365_v0  ;;  %v1061_v46 = vmul.u32.u64.high %v370_v60, %v365_v0, %v1060_v25 }
  0x5d   :  { %v771_v43 = vadd.f32 -1.0, %v162_v27  ;;  %v1065_v16 = vsub.s32 %v279_v54, %v282_v21  ;;  %v439_v47 = vand.u32 31, %v437_v6  ;;  %v85_v15 = vmul.u32 830770091, %v1032_v26 }
  0x5e   :  { %v377_v7 = vmul.u32 %v370_v60, %v361_v22  ;;  %v86_v29 = vmul.u32 830770091, %v1049_v40  ;;  %v87_v38 = vshrl.u32 %v83_v9, 14  ;;  %vm379_vm12 = vc.u32 %v1058_v62, %v1060_v25 }
  0x5f   :  { %v285_v56 = vsub.s32 0, %v1065_v16  ;;  %v440_v28 = vsub.s32 32, %v439_v47  ;;  %v380_v48 = vadd.s32 1, %v1061_v46  ;;  %v88_v11 = vshrl.u32 %v84_v55, 14 }
  0x60   :  { %v1073_v37 = vmul.f32 6.2831855, %v771_v43  ;;  %v425_v30 = vand.u32 2147483647, %v950_v41  ;;  %v1078_v31 = vshrl.u32 %v437_v6, 5  ;;  %v442_v60 = vshll.u32 %v898_v63, %v439_v47 }
  0x61   :  { %v773_v27 = vmin.u32 %v285_v56, %v1065_v16  ;;  %v381_v26 = vsel %vm379_vm12, %v380_v48, %v1061_v46  ;;  %v445_v45 = vshll.u32 %v899_v3, %v439_v47  ;;  %v443_v32 = vshrl.u32 %v899_v3, %v440_v28 }
  0x62   :  { %v382_v57 = vadd.s32 %v381_v26, %v377_v7  ;;  %v446_v33 = vshrl.u32 %v900_v5, %v440_v28  ;;  %v448_v34 = vshll.u32 %v900_v5, %v439_v47  ;;  %v449_v19 = vshrl.u32 %v901_v20, %v440_v28 }
  0x63   :  { %v287_v54 = vclz %v773_v27  ;;  %v451_v35 = vshll.u32 %v901_v20, %v439_v47  ;;  %v452_v36 = vshrl.u32 %v902_v23, %v440_v28  ;;  %v432_v44 = vand.u32 8388607, %v425_v30 }
  0x64   :  { %v383_v42 = vadd.s32 536870912, %v382_v57  ;;  %v454_v51 = vshll.u32 %v902_v23, %v439_v47  ;;  %v89_v53 = vshrl.u32 %v85_v15, 14  ;;  %v90_v12 = vshrl.u32 %v86_v29, 14 }
  0x65   :  { %v774_v39 = vadd.s32 4294967294, %v287_v54  ;;  %v453_v40 = vor.u32 %v452_v36, %v451_v35  ;;  %v455_v0 = vshrl.u32 %v903_v17, %v440_v28  ;;  %vm460_vm14 = vcmp.lt.s32.totalorder %v1078_v31, 4 }
  0x66   :  { %v1092_v4 = vshrl.u32 %v383_v42, 30  ;;  %v531_v6 = vand.u32 2139095040, %v1073_v37  ;;  %v444_v21 = vor.u32 %v443_v32, %v442_v60  ;;  %v447_v22 = vor.u32 %v446_v33, %v445_v45 }
  0x67   :  { %vm775_vm13 = vcmp.lt.s32.totalorder %v774_v39, 0  ;;  %v450_v24 = vor.u32 %v449_v19, %v448_v34  ;;  %v456_v8 = vor.u32 %v455_v0, %v454_v51  ;;  %v433_v43 = vor.u32 8388608, %v432_v44 }
  0x68   :  { %v385_v46 = vshll.u32 %v1092_v4, 30  ;;  %vm457_vm15 = vcmp.lt.s32.totalorder %v1078_v31, 1  ;;  %vm459_vm0 = vcmp.lt.s32.totalorder %v1078_v31, 3  ;;  %v91_v47 = vxor.u32 %v87_v38, %v83_v9 }
  0x69   :  { %v290_v56 = vsel %vm775_vm13, 0, %v774_v39  ;;  %v441_v7 = vshrl.u32 %v898_v63, %v440_v28  ;;  %v466_v48 = vsel %vm460_vm14, %v453_v40, 920167782  ;;  %vm458_vm1 = vcmp.lt.s32.totalorder %v1078_v31, 2 }
  0x6a   :  { %v1102_v27 = vsub.s32 %v382_v57, %v385_v46  ;;  %v462_v26 = vsel %vm460_vm14, %v450_v24, 2102212464  ;;  %v532_v60 = vshrl.u32 %v531_v6, 23  ;;  %v465_v45 = vsel %vm457_vm15, %v444_v21, %v447_v22 }
  0x6b   :  { %v467_v9 = vsel %vm459_vm0, %v450_v24, %v466_v48  ;;  %v469_v28 = vsel %vm457_vm15, %v447_v22, %v450_v24  ;;  %v470_v38 = vsel %vm460_vm14, %v456_v8, 1326507024  ;;  %v92_v54 = vxor.u32 %v88_v11, %v84_v55 }
  0x6c   :  { %v295_v57 = vsub.s32 4294967266, %v290_v56  ;;  %v388_v32 = vsub.s32 0, %v1102_v27  ;;  %v473_v33 = vshll.u32 %v433_v43, 8  ;;  %v93_v34 = vxor.u32 %v89_v53, %v85_v15 }
  0x6d   :  { %v94_v19 = vxor.u32 %v90_v12, %v86_v29  ;;  %v461_v35 = vsel %vm457_vm15, %v441_v7, %v444_v21  ;;  %v471_v36 = vsel %vm459_vm0, %v453_v40, %v470_v38  ;;  %v463_v42 = vsel %vm459_vm0, %v447_v22, %v462_v26 }
  0x6e   :  { %v777_v39 = vmin.u32 %v388_v32, %v1102_v27  ;;  %v468_v55 = vsel %vm458_vm1, %v465_v45, %v467_v9  ;;  %v472_v11 = vsel %vm458_vm1, %v469_v28, %v471_v36  ;;  %v143_v44 = vshrl.u32 %v91_v47, 9 }
  0x6f   :  { %v275_v15 = vadd.s32 %v1000_v52, %v1008_v10  ;;  %v291_v29 = vsub.s32 32, %v290_v56  ;;  %v784_v51 = vadd.s32 4294967169, %v532_v60  ;;  %v296_v53 = vadd.s32 127, %v295_v57 }
  0x70   :  { %v390_v12 = vclz %v777_v39  ;;  %v1129_v40 = vmul.u32.u64.low %v473_v33, %v472_v11  ;;  %v1130_v0 = vmul.u32.u64.high %v473_v33, %v472_v11, %v1129_v40  ;;  %v464_v6 = vsel %vm458_vm1, %v461_v35, %v463_v42 }
  0x71   :  { %v1134_v21 = vmul.u32.u64.low %v473_v33, %v468_v55  ;;  %v1135_v22 = vmul.u32.u64.high %v473_v33, %v468_v55, %v1134_v21  ;;  %v538_v24 = vadd.s32 1, %v784_v51  ;;  %v144_v8 = vshrl.u32 %v92_v54, 9 }
  0x72   :  { %v145_v46 = vshrl.u32 %v93_v34, 9  ;;  %v146_v43 = vshrl.u32 %v94_v19, 9  ;;  %v778_v47 = vadd.s32 4294967294, %v390_v12  ;;  %v292_v52 = vshll.u32 %v1065_v16, %v290_v56 }
  0x73   :  { %v293_v10 = vshrl.u32 %v275_v15, %v291_v29  ;;  %v528_v7 = vand.u32 2147483647, %v1073_v37  ;;  %vm539_vm2 = vcmp.gt.s32.totalorder %v538_v24, 0  ;;  %v378_v48 = vadd.s32 %v1060_v25, %v1058_v62 }
  0x74   :  { %vm779_vm3 = vcmp.lt.s32.totalorder %v778_v47, 0  ;;  %v480_v31 = vmul.u32 %v473_v33, %v464_v6  ;;  %vm482_vm4 = vc.u32 %v1130_v0, %v1134_v21  ;;  %v297_v26 = vshll.u32 %v296_v53, 23 }
  0x75   :  { %v393_v60 = vsel %vm779_vm3, 0, %v778_v47  ;;  %v483_v45 = vadd.s32 1, %v1135_v22  ;;  %v540_v9 = vsel %vm539_vm2, %v538_v24, 0  ;;  %v1145_v28 = vor.u32 1065353216, %v143_v44 }
  0x76   :  { %v394_v16 = vsub.s32 32, %v393_v60  ;;  %v395_v56 = vshll.u32 %v1102_v27, %v393_v60  ;;  %v398_v38 = vsub.s32 4294967266, %v393_v60  ;;  %v1148_v54 = vor.u32 1065353216, %v144_v8 }
  0x77   :  { %v294_v57 = vor.u32 %v293_v10, %v292_v52  ;;  %v484_v62 = vsel %vm482_vm4, %v483_v45, %v1135_v22  ;;  %v542_v25 = vand.u32 31, %v540_v9  ;;  %v1151_v32 = vor.u32 1065353216, %v145_v46 }
  0x78   :  { %v396_v33 = vshrl.u32 %v378_v48, %v394_v16  ;;  %v399_v34 = vadd.s32 127, %v398_v38  ;;  %v485_v19 = vadd.s32 %v484_v62, %v480_v31  ;;  %v1153_v35 = vor.u32 1065353216, %v146_v43 }
  0x79   :  { %v298_v36 = vor.u32 4788187, %v297_v26  ;;  %v535_v39 = vand.u32 8388607, %v528_v7  ;;  %v543_v42 = vsub.s32 32, %v542_v25  ;;  %v545_v44 = vshll.u32 %v898_v63, %v542_v25 }
  0x7a   :  { %v397_v27 = vor.u32 %v396_v33, %v395_v56  ;;  %v400_v55 = vshll.u32 %v399_v34, 23  ;;  %v486_v11 = vadd.s32 536870912, %v485_v19  ;;  %v301_v15 = vcvt.s32.f32 %v294_v57 }
  0x7b   :  { %v546_v29 = vshrl.u32 %v899_v3, %v543_v42  ;;  %v548_v51 = vshll.u32 %v899_v3, %v542_v25  ;;  %v549_v53 = vshrl.u32 %v900_v5, %v543_v42  ;;  %v541_v6 = vshrl.u32 %v540_v9, 5 }
  0x7c   :  { %v401_v12 = vor.u32 4788187, %v400_v55  ;;  %v1161_v40 = vshrl.u32 %v486_v11, 30  ;;  %v554_v22 = vshll.u32 %v901_v20, %v542_v25  ;;  %v299_v24 = vand.u32 2147483647, %v298_v36 }
  0x7d   :  { %v551_v8 = vshll.u32 %v900_v5, %v542_v25  ;;  %v552_v46 = vshrl.u32 %v901_v20, %v543_v42  ;;  %v555_v43 = vshrl.u32 %v902_v23, %v543_v42  ;;  %v404_v52 = vcvt.s32.f32 %v397_v27 }
  0x7e   :  { %v402_v47 = vand.u32 2147483647, %v401_v12  ;;  %v488_v10 = vshll.u32 %v1161_v40, 30  ;;  %v547_v3 = vor.u32 %v546_v29, %v545_v44  ;;  %v550_v48 = vor.u32 %v549_v53, %v548_v51 }
  0x7f   :  { %v556_v31 = vor.u32 %v555_v43, %v554_v22  ;;  %v557_v26 = vshll.u32 %v902_v23, %v542_v25  ;;  %v558_v60 = vshrl.u32 %v903_v17, %v543_v42  ;;  %v167_v45 = vsub.f32 2.0, %v1145_v28 }
  0x80   :  { %v1171_v9 = vsub.s32 %v485_v19, %v488_v10  ;;  %v536_v5 = vor.u32 8388608, %v535_v39  ;;  %vm560_vm5 = vcmp.lt.s32.totalorder %v541_v6, 1  ;;  %v302_v20 = vmul.f32 %v301_v15, %v299_v24 }
  0x81   :  { %v544_v16 = vshrl.u32 %v898_v63, %v543_v42  ;;  %v553_v56 = vor.u32 %v552_v46, %v551_v8  ;;  %vm563_vm6 = vcmp.lt.s32.totalorder %v541_v6, 4  ;;  %v405_v38 = vmul.f32 %v404_v52, %v402_v47 }
  0x82   :  { %v491_v57 = vsub.s32 0, %v1171_v9  ;;  %vm561_vm7 = vcmp.lt.s32.totalorder %v541_v6, 2  ;;  %vm562_vm8 = vcmp.lt.s32.totalorder %v541_v6, 3  ;;  %v559_v62 = vor.u32 %v558_v60, %v557_v26 }
  0x83   :  { %v565_v23 = vsel %vm563_vm6, %v553_v56, 2102212464  ;;  %v568_v17 = vsel %vm560_vm5, %v547_v3, %v550_v48  ;;  %v569_v28 = vsel %vm563_vm6, %v556_v31, 920167782  ;;  %v168_v25 = vsub.f32 2.0, %v1148_v54 }
  0x84   :  { %v169_v33 = vsub.f32 2.0, %v1151_v32  ;;  %v170_v63 = vsub.f32 2.0, %v1153_v35  ;;  %v781_v34 = vmin.u32 %v491_v57, %v1171_v9  ;;  %v303_v19 = vxor.u32 2147483648, %v302_v20 }
  0x85   :  { %v564_v36 = vsel %vm560_vm5, %v544_v16, %v547_v3  ;;  %v570_v39 = vsel %vm562_vm8, %v553_v56, %v569_v28  ;;  %v576_v42 = vshll.u32 %v536_v5, 8  ;;  %v566_v55 = vsel %vm562_vm8, %v550_v48, %v565_v23 }
  0x86   :  { %v493_v27 = vclz %v781_v34  ;;  %v571_v11 = vsel %vm561_vm7, %v568_v17, %v570_v39  ;;  %v572_v44 = vsel %vm560_vm5, %v550_v48, %v553_v56  ;;  %vm221_vm9 = vcmp.lt.s32.totalorder %v939_v13, 0 }
  0x87   :  { %vm324_vm10 = vcmp.lt.s32.totalorder %v941_v14, 0  ;;  %v406_v54 = vxor.u32 2147483648, %v405_v38  ;;  %v573_v32 = vsel %vm563_vm6, %v559_v62, 1326507024  ;;  %vm1192_vm11 = vcmp.le.f32.partialorder %v219_v18, 0.7853982 }
  0x88   :  { %v481_v15 = vadd.s32 %v1134_v21, %v1130_v0  ;;  %v782_v29 = vadd.s32 4294967294, %v493_v27  ;;  %v574_v51 = vsel %vm562_vm8, %v556_v31, %v573_v32  ;;  %v567_v53 = vsel %vm561_vm7, %v564_v36, %v566_v55 }
  0x89   :  { %v575_v12 = vsel %vm561_vm7, %v572_v44, %v574_v51  ;;  %v1201_v22 = vmul.u32.u64.low %v576_v42, %v571_v11  ;;  %v1202_v24 = vmul.u32.u64.high %v576_v42, %v571_v11, %v1201_v22  ;;  %v304_v18 = vsel %vm221_vm9, %v303_v19, %v302_v20 }
  0x8a   :  { %vm783_vm12 = vcmp.lt.s32.totalorder %v782_v29, 0  ;;  %v1207_v8 = vmul.u32.u64.low %v576_v42, %v575_v12  ;;  %v1208_v46 = vmul.u32.u64.high %v576_v42, %v575_v12, %v1207_v8  ;;  %813 = vlog2.f32 %v167_v45 }
  0x8b   :  { %vm1212_vm13 = vcmp.le.f32.partialorder %v322_v50, 0.7853982  ;;  %v407_v21 = vsel %vm324_vm10, %v406_v54, %v405_v38  ;;  %v496_v6 = vsel %vm783_vm12, 0, %v782_v29  ;;  %v583_v10 = vmul.u32 %v576_v42, %v567_v53 }
  0x8c   :  { %v497_v43 = vsub.s32 32, %v496_v6  ;;  %v498_v47 = vshll.u32 %v1171_v9, %v496_v6  ;;  %v501_v52 = vsub.s32 4294967266, %v496_v6  ;;  %815 = vlog2.f32 %v168_v25 }
  0x8d   :  { %v307_v3 = vsel %vm1192_vm11, %v939_v13, %v304_v18  ;;  %v586_v48 = vadd.s32 1, %v1202_v24  ;;  %817 = vlog2.f32 %v169_v33  ;;  %vm585_vm14 = vc.u32 %v1208_v46, %v1201_v22 }
  0x8e   :  { %v499_v50 = vshrl.u32 %v481_v15, %v497_v43  ;;  %v502_v31 = vadd.s32 127, %v501_v52  ;;  %819 = vlog2.f32 %v170_v63  ;;  %v410_v26 = vsel %vm1212_vm13, %v941_v14, %v407_v21 }
  0x8f   :  { %v587_v60 = vsel %vm585_vm14, %v586_v48, %v1202_v24  ;;  %821 = vcosq.f32 %v307_v3  ;;  %v305_v38 = vsub.s32 4, %v1045_v49  ;;  %v408_v23 = vsub.s32 4, %v1092_v4 }
  0x90   :  { %v500_v45 = vor.u32 %v499_v50, %v498_v47  ;;  %v503_v9 = vshll.u32 %v502_v31, 23  ;;  %v588_v5 = vadd.s32 %v587_v60, %v583_v10  ;;  %823 = vsinq.f32 %v307_v3 }
  0x91   :  { %825 = vcosq.f32 %v410_v26  ;;  %v306_v25 = vsel %vm221_vm9, %v305_v38, %v1045_v49  ;;  %vm427_vm15 = vcmp.lt.s32.totalorder %v950_v41, 0  ;;  %vm1240_vm0 = vcmp.le.f32.partialorder %v425_v30, 0.7853982 }
  0x92   :  { %v504_v20 = vor.u32 4788187, %v503_v9  ;;  %v507_v16 = vcvt.s32.f32 %v500_v45  ;;  %v589_v56 = vadd.s32 536870912, %v588_v5  ;;  %827 = vsinq.f32 %v410_v26 }
  0x93   :  { %v409_v36 = vsel %vm324_vm10, %v408_v23, %v1092_v4  ;;  %v308_v42 = vsel %vm1192_vm11, 0, %v306_v25  ;;  %v511_v27 = vsub.s32 4, %v1161_v40  ;;  %vm311_vm1 = vweird.f32 %v939_v13 }
  0x94   :  { %v505_v57 = vand.u32 2147483647, %v504_v20  ;;  %v1230_v62 = vshrl.u32 %v589_v56, 30  ;;  %v411_v4 = vsel %vm1212_vm13, 0, %v409_v36  ;;  %v312_v29 = vand.u32 3, %v308_v42 }
  0x95   :  { %v512_v53 = vsel %vm427_vm15, %v511_v27, %v1161_v40  ;;  %v415_v18 = vand.u32 3, %v411_v4  ;;  %v584_v3 = vadd.s32 %v1201_v22, %v1208_v46  ;;  %vm414_vm9 = vweird.f32 %v941_v14 }
  0x96   :  { %v508_v17 = vmul.f32 %v507_v16, %v505_v57  ;;  %v591_v28 = vshll.u32 %v1230_v62, 30  ;;  %vm314_vm2 = vcmp.eq.s32.totalorder %v312_v29, 0  ;;  %vm317_vm3 = vcmp.eq.s32.totalorder %v312_v29, 2 }
  0x97   :  { %v814_v33 = vpop.eup %813  ;;  %v514_v52 = vsel %vm1240_vm0, 0, %v512_v53  ;;  %vm417_vm5 = vcmp.eq.s32.totalorder %v415_v18, 0  ;;  %vm420_vm6 = vcmp.eq.s32.totalorder %v415_v18, 2  ;;  %vm313_vm7 = vcmp.lt.s32.totalorder %v312_v29, 2 }
  0x98   :  { %v509_v34 = vxor.u32 2147483648, %v508_v17  ;;  %v592_v19 = vsub.s32 %v588_v5, %v591_v28  ;;  %v180_v54 = vmul.f32 0.6931472, %v814_v33  ;;  %v518_v5 = vand.u32 3, %v514_v52 }
  0x99   :  { %v816_v39 = vpop.eup %815  ;;  %vm416_vm8 = vcmp.lt.s32.totalorder %v415_v18, 2  ;;  %vm517_vm13 = vweird.f32 %v950_v41  ;;  %vm530_vm14 = vcmp.lt.s32.totalorder %v1073_v37, 0 }
  0x9a   :  { %v510_v49 = vsel %vm427_vm15, %v509_v34, %v508_v17  ;;  %v594_v55 = vsub.s32 0, %v592_v19  ;;  %v818_v30 = vpop.eup %817  ;;  %v182_v15 = vmul.f32 0.6931472, %v816_v39  ;;  %v1260_v43 = vmul.f32 -2.0, %v180_v54 }
  0x9b   :  { %v513_v11 = vsel %vm1240_vm0, %v950_v41, %v510_v49  ;;  %v820_v44 = vpop.eup %819  ;;  %v184_v21 = vmul.f32 0.6931472, %v818_v30  ;;  %vm520_vm10 = vcmp.eq.s32.totalorder %v518_v5, 0  ;;  %vm523_vm11 = vcmp.eq.s32.totalorder %v518_v5, 2 }
  0x9c   :  { %829 = vcosq.f32 %v513_v11  ;;  %v785_v32 = vmin.u32 %v594_v55, %v592_v19  ;;  %v822_v35 = vpop.eup %821  ;;  %v186_v6 = vmul.f32 0.6931472, %v820_v44  ;;  %v1262_v47 = vmul.f32 -2.0, %v182_v15 }
  0x9d   :  { %831 = vsinq.f32 %v513_v11  ;;  %v824_v51 = vpop.eup %823  ;;  %v318_v40 = vxor.u32 2147483648, %v822_v35  ;;  %v1269_v9 = vmul.f32 -2.0, %v184_v21  ;;  %vm519_vm12 = vcmp.lt.s32.totalorder %v518_v5, 2 }
  0x9e   :  { %v596_v12 = vclz %v785_v32  ;;  %v826_v24 = vpop.eup %825  ;;  %v315_v10 = vxor.u32 2147483648, %v824_v51  ;;  %833 = vrsqrt.f32 %v1260_v43  ;;  %v1276_v57 = vmul.f32 -2.0, %v186_v6 }
  0x9f   :  { %v828_v8 = vpop.eup %827  ;;  %v421_v50 = vxor.u32 2147483648, %v826_v24  ;;  %v319_v16 = vsel %vm317_vm3, %v318_v40, %v824_v51  ;;  %835 = vrsqrt.f32 %v1262_v47  ;;  %vm1290_vm15 = vcmp.le.f32.partialorder %v528_v7, 0.7853982 }
  0xa0   :  { %v786_v0 = vadd.s32 4294967294, %v596_v12  ;;  %v418_v48 = vxor.u32 2147483648, %v828_v8  ;;  %v316_v20 = vsel %vm314_vm2, %v822_v35, %v315_v10  ;;  %837 = vrsqrt.f32 %v1269_v9 }
  0xa1   :  { %v422_v38 = vsel %vm420_vm6, %v421_v50, %v828_v8  ;;  %v320_v25 = vsel %vm313_vm7, %v316_v20, %v319_v16  ;;  %839 = vrsqrt.f32 %v1276_v57  ;;  %v614_v41 = vsub.s32 4, %v1230_v62 }
  0xa2   :  { %vm787_vm4 = vcmp.lt.s32.totalorder %v786_v0, 0  ;;  %v419_v56 = vsel %vm417_vm5, %v826_v24, %v418_v48  ;;  %v321_v42 = vsel %vm311_vm1, nan, %v320_v25  ;;  %vm193_vm0 = vcmp.eq.f32.partialorder %v1260_v43, inf }
  0xa3   :  { %v599_v31 = vsel %vm787_vm4, 0, %v786_v0  ;;  %v423_v63 = vsel %vm416_vm8, %v419_v56, %v422_v38  ;;  %v631_v54 = vmul.f32 %v321_v42, %v321_v42  ;;  %v615_v21 = vsel %vm530_vm14, %v614_v41, %v1230_v62 }
  0xa4   :  { %v600_v26 = vsub.s32 32, %v599_v31  ;;  %v601_v60 = vshll.u32 %v592_v19, %v599_v31  ;;  %v604_v45 = vsub.s32 4294967266, %v599_v31  ;;  %v424_v55 = vsel %vm414_vm9, nan, %v423_v63 }
  0xa5   :  { %v632_v32 = vmul.f32 %v424_v55, %v424_v55  ;;  %v635_v51 = vsub.f32 1.0, %v631_v54  ;;  %vm200_vm1 = vcmp.eq.f32.partialorder %v1262_v47, inf  ;;  %vm195_vm2 = vcmp.eq.f32.partialorder %v1260_v43, 0.0 }
  0xa6   :  { %v602_v22 = vshrl.u32 %v584_v3, %v600_v26  ;;  %v605_v46 = vadd.s32 127, %v604_v45  ;;  %v196_v3 = vand.u32 2147483648, %v1260_v43  ;;  %v203_v48 = vand.u32 2147483648, %v1262_v47 }
  0xa7   :  { %v636_v12 = vsub.f32 1.0, %v632_v32  ;;  %v1305_v6 = vmax.f32 %v635_v51, 0.0  ;;  %vm207_vm3 = vcmp.eq.f32.partialorder %v1269_v9, inf  ;;  %v617_v62 = vsel %vm1290_vm15, 0, %v615_v21 }
  0xa8   :  { %v603_v23 = vor.u32 %v602_v22, %v601_v60  ;;  %v606_v17 = vshll.u32 %v605_v46, 23  ;;  %vm202_vm4 = vcmp.eq.f32.partialorder %v1262_v47, 0.0  ;;  %v210_v26 = vand.u32 2147483648, %v1269_v9 }
  0xa9   :  { %v830_v28 = vpop.eup %829  ;;  %v1309_v52 = vmax.f32 %v636_v12, 0.0  ;;  %vm209_vm5 = vcmp.eq.f32.partialorder %v1269_v9, 0.0  ;;  %vm214_vm6 = vcmp.eq.f32.partialorder %v1276_v57, inf  ;;  %v621_v20 = vand.u32 3, %v617_v62 }
  0xaa   :  { %v832_v33 = vpop.eup %831  ;;  %v524_v34 = vxor.u32 2147483648, %v830_v28  ;;  %v607_v19 = vor.u32 4788187, %v606_v17  ;;  %v610_v36 = vcvt.s32.f32 %v603_v23  ;;  %vm216_vm7 = vcmp.eq.f32.partialorder %v1276_v57, 0.0 }
  0xab   :  { %v521_v39 = vxor.u32 2147483648, %v832_v33  ;;  %v834_v15 = vpop.eup %833  ;;  %v217_v56 = vand.u32 2147483648, %v1276_v57  ;;  %vm626_vm8 = vcmp.eq.s32.totalorder %v621_v20, 2  ;;  %v904_v23 = vmov 1983009808  }
  0xac   :  { %v525_v49 = vsel %vm523_vm11, %v524_v34, %v832_v33  ;;  %v608_v27 = vand.u32 2147483647, %v607_v19  ;;  %v836_v53 = vpop.eup %835  ;;  %v192_v18 = vmul.f32 %v834_v15, %v1260_v43  ;;  %v707_v17 = vunpack.c.l.s4 %v904_v23 }
  0xad   :  { %v522_v30 = vsel %vm520_vm10, %v830_v28, %v521_v39  ;;  %v838_v24 = vpop.eup %837  ;;  %v199_v8 = vmul.f32 %v836_v53, %v1262_v47  ;;  %vm623_vm9 = vcmp.eq.s32.totalorder %v621_v20, 0  ;;  %vm622_vm10 = vcmp.lt.s32.totalorder %v621_v20, 2 }
  0xae   :  { %v526_v11 = vsel %vm519_vm12, %v522_v30, %v525_v49  ;;  %v611_v44 = vmul.f32 %v610_v36, %v608_v27  ;;  %v840_v10 = vpop.eup %839  ;;  %v206_v40 = vmul.f32 %v838_v24, %v1269_v9  ;;  %v194_v50 = vsel %vm193_vm0, %v1260_v43, %v192_v18 }
  0xaf   :  { %v527_v35 = vsel %vm517_vm13, nan, %v526_v11  ;;  %v201_v31 = vsel %vm200_vm1, %v1262_v47, %v199_v8  ;;  %v213_v60 = vmul.f32 %v840_v10, %v1276_v57  ;;  %v1332_v47 = vsel %vm195_vm2, %v196_v3, %v194_v50  ;;  %v695_v8 = vld [vmem:[#allocation3] sm:$0xff] }
  0xb0   :  { %v612_v13 = vxor.u32 2147483648, %v611_v44  ;;  %v633_v7 = vmul.f32 %v527_v35, %v527_v35  ;;  %v208_v5 = vsel %vm207_vm3, %v1269_v9, %v206_v40  ;;  %v1334_v16 = vsel %vm202_vm4, %v203_v48, %v201_v31 }
  0xb1   :  { %v1337_v22 = vsel %vm209_vm5, %v210_v26, %v208_v5  ;;  %v215_v46 = vsel %vm214_vm6, %v1276_v57, %v213_v60  ;;  %v687_v38 = vmul.f32 %v321_v42, %v1332_v47  ;;  %v688_v43 = vmul.f32 %v424_v55, %v1334_v16 }
  0xb2   :  { %v613_v14 = vsel %vm530_vm14, %v612_v13, %v611_v44  ;;  %v637_v0 = vsub.f32 1.0, %v633_v7  ;;  %v1346_v63 = vsel %vm216_vm7, %v217_v56, %v215_v46  ;;  %vm620_vm11 = vweird.f32 %v1073_v37 }
  0xb3   :  { %v616_v29 = vsel %vm1290_vm15, %v1073_v37, %v613_v14  ;;  %v689_v19 = vmul.f32 %v527_v35, %v1337_v22  ;;  %v696_v39 = vmul.f32 0.1, %v687_v38  ;;  %v697_v42 = vmul.f32 0.1, %v688_v43 }
  0xb4   :  { %841 = vcosq.f32 %v616_v29  ;;  %v1324_v45 = vmax.f32 %v637_v0, 0.0  ;;  %v708_v49 = vunpack.c.0.s8 %v707_v17  ;;  %vm645_vm12 = vcmp.eq.f32.partialorder %v1305_v6, inf }
  0xb5   :  { %843 = vsinq.f32 %v616_v29  ;;  %v698_v54 = vmul.f32 0.1, %v689_v19  ;;  %v704_v57 = vcombine.low %v696_v39, %v697_v42  ;;  %vm652_vm13 = vcmp.eq.f32.partialorder %v1309_v52, inf  ;;  %v724_v19 = vld [vmem:[#allocation3 + $0x8] sm:$0xff] }
  0xb6   :  { %845 = vrsqrt.f32 %v1305_v6  ;;  %v711_v13 = vsub.s32 %v708_v49, %v924_v1  ;;  %vm647_vm14 = vcmp.eq.f32.partialorder %v1305_v6, 0.0  ;;  %v648_v53 = vand.u32 2147483648, %v1305_v6 }
  0xb7   :  { %847 = vrsqrt.f32 %v1309_v52  ;;  %v655_v1 = vand.u32 2147483648, %v1309_v52  ;;  %vm654_vm15 = vcmp.eq.f32.partialorder %v1309_v52, 0.0  ;;  %vm659_vm0 = vcmp.eq.f32.partialorder %v1324_v45, inf }
  0xb8   :  { %849 = vrsqrt.f32 %v1324_v45  ;;  %v712_v51 = vrot.slane %v704_v57, %v711_v13  ;;  %v671_v0 = vand.u32 2147483648, %v930_v58  ;;  %v672_v10 = vand.u32 2147483648, %v932_v59 }
  0xb9   :  { %v662_v48 = vand.u32 2147483648, %v1324_v45  ;;  %vm661_vm1 = vcmp.eq.f32.partialorder %v1324_v45, 0.0  ;;  %v674_v56 = vand.u32 2147483648, %v970_v61 }
  0xc1   :  { %v842_v9 = vpop.eup %841 }
  0xc2   :  { %v844_v28 = vpop.eup %843  ;;  %v627_v25 = vxor.u32 2147483648, %v842_v9 }
  0xc3   :  { %v624_v33 = vxor.u32 2147483648, %v844_v28  ;;  %v846_v30 = vpop.eup %845 }
  0xc4   :  { %v628_v34 = vsel %vm626_vm8, %v627_v25, %v844_v28  ;;  %v848_v4 = vpop.eup %847  ;;  %v644_v35 = vmul.f32 %v846_v30, %v1305_v6 }
  0xc5   :  { %v625_v36 = vsel %vm623_vm9, %v842_v9, %v624_v33  ;;  %v651_v14 = vmul.f32 %v848_v4, %v1309_v52  ;;  %v850_v29 = vpop.eup %849 }
  0xc6   :  { %v629_v27 = vsel %vm622_vm10, %v625_v36, %v628_v34  ;;  %v646_v12 = vsel %vm645_vm12, %v1305_v6, %v644_v35  ;;  %v658_v18 = vmul.f32 %v850_v29, %v1324_v45 }
  0xc7   :  { %v630_v55 = vsel %vm620_vm11, nan, %v629_v27  ;;  %v653_v24 = vsel %vm652_vm13, %v1309_v52, %v651_v14  ;;  %v649_v40 = vsel %vm647_vm14, %v648_v53, %v646_v12  ;;  %v673_v52 = vand.u32 2147483648, %v936_v2 }
  0xc8   :  { %v634_v11 = vmul.f32 %v630_v55, %v630_v55  ;;  %v690_v44 = vmul.f32 %v630_v55, %v1346_v63  ;;  %v656_v3 = vsel %vm654_vm15, %v655_v1, %v653_v24  ;;  %v660_v6 = vsel %vm659_vm0, %v1324_v45, %v658_v18 }
  0xc9   :  { %v679_v50 = vxor.u32 %v671_v0, %v649_v40  ;;  %v680_v31 = vxor.u32 %v672_v10, %v656_v3  ;;  %v663_v26 = vsel %vm661_vm1, %v662_v48, %v660_v6 }
  0xca   :  { %v638_v32 = vsub.f32 1.0, %v634_v11  ;;  %v699_v37 = vmul.f32 0.1, %v690_v44  ;;  %v681_v60 = vxor.u32 %v673_v52, %v663_v26 }
  0xcb   :  { %v691_v58 = vmul.f32 %v679_v50, %v1332_v47  ;;  %v692_v59 = vmul.f32 %v680_v31, %v1334_v16 }
  0xcc   :  { %v642_v15 = vmax.f32 %v638_v32, 0.0  ;;  %v705_v41 = vcombine.low %v698_v54, %v699_v37  ;;  %v693_v45 = vmul.f32 %v681_v60, %v1337_v22 }
  0xcd   :  { %v725_v38 = vmul.f32 0.1, %v691_v58  ;;  %v726_v2 = vmul.f32 0.1, %v692_v59 }
  0xce   :  { %851 = vrsqrt.f32 %v642_v15  ;;  %v719_v7 = vrot.slane %v705_v41, %v711_v13  ;;  %vm666_vm2 = vcmp.eq.f32.partialorder %v642_v15, inf  ;;  %v669_v20 = vand.u32 2147483648, %v642_v15 }
  0xcf   :  { %vm668_vm3 = vcmp.eq.f32.partialorder %v642_v15, 0.0  ;;  %v727_v28 = vmul.f32 0.1, %v693_v45  ;;  %v733_v47 = vcombine.low %v725_v38, %v726_v2 }
  0xd0   :  { %v720_v21 = vcombine.low %v712_v51, %v719_v7 }
  0xd1   :  { %v741_v33 = vrot.slane %v733_v47, %v711_v13 }
  0xd2   :  { %v722_v62 = vadd.f32 %v720_v21, %v695_v8 }
  0xd4   :  { %723 = vst [vmem:[#allocation6] sm:$0xff] %v722_v62 }
  0xdb   :  { %v852_v5 = vpop.eup %851 }
  0xdc   :  { %v665_v46 = vmul.f32 %v852_v5, %v642_v15 }
  0xde   :  { %v667_v9 = vsel %vm666_vm2, %v642_v15, %v665_v46 }
  0xdf   :  { %v670_v43 = vsel %vm668_vm3, %v669_v20, %v667_v9 }
  0xe0   :  { %v682_v23 = vxor.u32 %v674_v56, %v670_v43 }
  0xe2   :  { %v694_v17 = vmul.f32 %v682_v23, %v1346_v63 }
  0xe4   :  { %v728_v25 = vmul.f32 0.1, %v694_v17 }
  0xe6   :  { %v734_v16 = vcombine.low %v727_v28, %v728_v25 }
  0xe8   :  { %v748_v34 = vrot.slane %v734_v16, %v711_v13 }
  0xea   :  { %v749_v36 = vcombine.low %v741_v33, %v748_v34 }
  0xec   :  { %v751_v61 = vadd.f32 %v749_v36, %v724_v19 }
  0xee   :  { %752 = vst [vmem:[#allocation6 + $0x8] sm:$0xff] %v751_v61 }
  0xef   :  { %884 = shalt.err (!%p881_p9)
}
  0xf0   :  { %762 = dma.vmem_to_hbm [thread:$0]  %s760_s1, 256, %s1380_s2, [#allocation5]  }
  0xf1   :  { %895 = dma.done.wait [#allocation5], 256  }
  0xf2   :  { %896 = vsyncadd [#allocation5], 4294967040 }
  0xf3   :  { %766 = vsyncpa [#allocation4], 1 }
  0xf4   :  { %767 = vsyncpa [#allocation5], 1 }

</bundles_post_ra>
